<compile_context>
chip_gen: v7x
topology: tpu7x:2x2x1
jax: 0.10.0
libtpu: 0.0.40
codegen_flags: <defaults>
</compile_context>

<pallas_src>
import functools

import numpy as np
import jax
import jax.numpy as jnp
from jax.experimental import pallas as pl
from jax.experimental.pallas import tpu as pltpu

# ----------------------------- sizes --------------------------------------
B, C, H, W = 2, 4, 16, 16          # input images, NCHW
P = 8                              # pupil grid / PSF size
NZ = 15                            # number of Zernike-like coefficients
PAD_LO, PAD_HI = (P - 1) // 2, P // 2   # PyTorch 'same' padding convention (3,4)
HP = H + P - 1                     # 23 padded rows
HPAD = 24                          # padded rows rounded to a multiple of 8
NSEG = B * C                       # 8 images packed along lanes
SEGW = 32                          # per-image lane segment (>= W + P - 1 = 23)
OUTW = NSEG * SEGW                 # 256: lane-dense conv width (2 full vregs)
KDIM = 256                         # conv-matmul contraction dim (HPAD*P=192 -> 256)
NPIX = P * P                       # 64 pupil pixels

# valid output lanes of a segment never read the neighbouring segment,
# and the band matrix never wraps around the 256-lane ring:
assert SEGW >= W + P - 1
assert HPAD % 8 == 0 and HPAD >= HP
assert HPAD * P <= KDIM
assert (H - 1) * P + NPIX <= KDIM


# -------------------------- fused kernel -----------------------------------
def _optical_kernel(a_ref, basis2_ref, ap2_ref, dft_ref, xstack_ref,
                    opt_ref, hpack_ref, psf_ref):
    dot = functools.partial(jnp.dot, preferred_element_type=jnp.float32)

    # ---- Zernike phase expansion as ONE matmul: (1,NZ) @ (NZ,128) ----------
    # basis2 = [basis_flat | basis_flat], so phase2 = [phase | phase].
    phase2 = dot(a_ref[...], basis2_ref[...])                        # (1,128)

    # complex pupil h = A * exp(i*phase) packed as [h_re | h_im] in one slab
    lane128 = jax.lax.broadcasted_iota(jnp.int32, (1, 2 * NPIX), 1)
    h_pack = ap2_ref[...] * jnp.where(lane128 < NPIX,
                                      jnp.cos(phase2), jnp.sin(phase2))
    hpack_ref[...] = h_pack                                          # (1,128)

    # ---- centered 2-D DFT: single (1,128)@(128,128) Kronecker matmul -------
    HH = dot(h_pack, dft_ref[...])                                   # [H_re|H_im]
    HH2 = HH * HH
    # |H|^2 via one 64-lane roll (both halves of psf2 hold the same values)
    psf2 = HH2 + pltpu.roll(HH2, NPIX, axis=1)                       # (1,128)
    inv = 1.0 / (0.5 * jnp.sum(psf2))     # scalar reciprocal, kept exact
    psf2 = psf2 * inv
    psf_ref[...] = psf2                   # (1,128): psf row-major, duplicated

    # ---- build the banded (block-Toeplitz) conv operator on the fly --------
    # band[r, rr*P + v] = psf[rr - r, v]  (zero outside 0 <= rr-r < P)
    # row r is psf_flat (64 values) placed at lane offset 8*r.
    lane256 = jax.lax.broadcasted_iota(jnp.int32, (1, KDIM), 1)
    psf_sparse = jnp.where(lane256 < NPIX,
                           jnp.concatenate([psf2, psf2], axis=1), 0.0)
    band = jnp.broadcast_to(psf_sparse, (H, KDIM))                   # (16,256)
    row = jax.lax.broadcasted_iota(jnp.int32, (H, KDIM), 0)
    # per-row lane shift of 8*r, realised as 4 rolls gated by the bits of r
    for bit, shift in ((1, P), (2, 2 * P), (4, 4 * P), (8, 8 * P)):
        band = jnp.where((row & bit) != 0,
                         pltpu.roll(band, shift, axis=1), band)

    # ---- depthwise PSF conv = ONE MXU matmul (16,256) @ (256,256) ----------
    opt_ref[...] = dot(band, xstack_ref[...])                        # unmasked vst


# --------------------------- full forward ----------------------------------
def optical_ensemble(x, a_zernike, basis2, ap2, dftm):
    # Pack NCHW activations into a lane-dense padded slab (layout plumbing):
    # image n = b*C + c lives in lane segment [n*SEGW, n*SEGW + SEGW).
    x8 = x.reshape(NSEG, H, W)
    xp = jnp.pad(x8, ((0, 0),
                      (PAD_LO, PAD_HI + (HPAD - HP)),     # rows -> 24 (x8 aligned)
                      (PAD_LO, SEGW - W - PAD_LO)))       # cols -> 32-lane segment
    xp = xp.transpose(1, 0, 2).reshape(HPAD, OUTW)        # (24, 256)
    xp = jnp.pad(xp, ((0, 0), (0, P)))                    # (24, 264) shift slack

    # Wrapper-side lane pre-shift + row stacking for the conv matmul:
    # row (rr*P + v) of xstack = xp[rr, v : v+256]; padded to 256 rows.
    xstack = jnp.stack([xp[:, v:v + OUTW] for v in range(P)], axis=1)  # (24,8,256)
    xstack = xstack.reshape(HPAD * P, OUTW)                            # (192,256)
    xstack = jnp.pad(xstack, ((0, KDIM - HPAD * P), (0, 0)))           # (256,256)

    a_row = a_zernike.reshape(1, NZ)

    vmem = pl.BlockSpec(memory_space=pltpu.MemorySpace.VMEM)
    opt_packed, h_pack, psf2 = pl.pallas_call(
        _optical_kernel,
        out_shape=(jax.ShapeDtypeStruct((H, OUTW), jnp.float32),     # packed conv out
                   jax.ShapeDtypeStruct((1, 2 * NPIX), jnp.float32), # [h_re | h_im]
                   jax.ShapeDtypeStruct((1, 2 * NPIX), jnp.float32)),# psf (dup halves)
        in_specs=[vmem] * 5,
        out_specs=(vmem, vmem, vmem),
    )(a_row, basis2, ap2, dftm, xstack)

    # valid output lanes are cols 0..W-1 of each 32-lane segment
    optical = (opt_packed.reshape(H, NSEG, SEGW)[:, :, :W]
               .transpose(1, 0, 2).reshape(B, C, H, W))
    # complex pupil assembled outside the kernel (no complex dtype in Pallas)
    h_out = (h_pack[0, :NPIX] + 1j * h_pack[0, NPIX:]).reshape(P, P)
    psf_out = psf2[0, :NPIX].reshape(P, P)
    return optical, a_zernike, h_out, psf_out


# --------------------- deterministic parameter setup -----------------------
def make_optics_params():
    yy, xx = np.meshgrid(np.linspace(-1.0, 1.0, P), np.linspace(-1.0, 1.0, P),
                         indexing="ij")
    aperture = (xx * xx + yy * yy <= 1.0).astype(np.float64)
    # 15 Zernike-like monomial basis functions x^i * y^j, total degree <= 4
    powers = [(s - t, t) for s in range(5) for t in range(s + 1)]
    basis = np.stack([aperture * (xx ** i) * (yy ** j) for (i, j) in powers])

    # DFT matrices with the output fftshift folded in
    k = np.arange(P)
    Wd = np.exp(-2j * np.pi * np.outer(k, k) / P)
    Fl = np.roll(Wd, P // 2, axis=0)       # shift of output rows
    Fr = np.roll(Wd, P // 2, axis=1)       # shift of output cols

    basis_flat = basis.reshape(NZ, NPIX)
    basis2 = np.concatenate([basis_flat, basis_flat], axis=1)        # (15,128)
    ap2 = np.concatenate([aperture.reshape(1, NPIX)] * 2, axis=1)    # (1,128)

    # real-form Kronecker operator of the centered DFT:
    # vec_r(Fl @ h @ Fr) = vec_r(h) @ (Fl^T (x) Fr)   (row vectors, row-major vec)
    K = np.kron(Fl.T, Fr)                                            # (64,64) complex
    dftm = np.block([[K.real, K.imag], [-K.imag, K.real]])           # (128,128)

    to_j = lambda a: jnp.asarray(a, jnp.float32)
    return (to_j(basis2), to_j(ap2), to_j(dftm),
            basis, aperture, Fl, Fr)


# ------------------------------- main ---------------------------------------
if __name__ == "__main__":
    key = jax.random.PRNGKey(0)
    kx, ka = jax.random.split(key)
    x = jax.random.uniform(kx, (B, C, H, W), jnp.float32)
    a_zernike = (0.1 * jax.random.normal(ka, (NZ,))).astype(jnp.float32)

    basis2, ap2, dftm, basis_np, ap_np, Fl, Fr = make_optics_params()

    fwd = jax.jit(optical_ensemble)
    outs = jax.block_until_ready(fwd(x, a_zernike, basis2, ap2, dftm))
    optical_output, a_out, h_out, psf_out = outs

    # -------- pure numpy reference (float64) for a correctness check --------
    a_np = np.asarray(a_zernike, np.float64)
    phase = np.einsum("k,kpq->pq", a_np, basis_np)
    h_ref = ap_np * np.exp(1j * phase)
    Hc = Fl @ h_ref @ Fr
    psf_ref = np.abs(Hc) ** 2
    psf_ref = psf_ref / psf_ref.sum()
    xpad = np.pad(np.asarray(x, np.float64),
                  ((0, 0), (0, 0), (PAD_LO, PAD_HI), (PAD_LO, PAD_HI)))
    conv_ref = np.zeros((B, C, H, W), np.float64)
    for u in range(P):
        for v in range(P):
            conv_ref += xpad[:, :, u:u + H, v:v + W] * psf_ref[u, v]

    assert np.allclose(np.asarray(psf_out), psf_ref, atol=1e-4, rtol=1e-3)
    assert np.allclose(np.asarray(h_out), h_ref, atol=1e-4, rtol=1e-3)
    assert np.allclose(np.asarray(optical_output), conv_ref, atol=1e-3, rtol=1e-3)
    assert np.allclose(np.asarray(a_out), np.asarray(a_zernike))

    print("KERNEL_OK")
</pallas_src>

<mosaic_0001>
module attributes {stable_mosaic.version = 11 : i64} {
  func.func @_optical_kernel(%arg0: memref<1x15xf32, #tpu.memory_space<vmem>>, %arg1: memref<15x128xf32, #tpu.memory_space<vmem>>, %arg2: memref<1x128xf32, #tpu.memory_space<vmem>>, %arg3: memref<128x128xf32, #tpu.memory_space<vmem>>, %arg4: memref<256x256xf32, #tpu.memory_space<vmem>>, %arg5: memref<16x256xf32, #tpu.memory_space<vmem>>, %arg6: memref<1x128xf32, #tpu.memory_space<vmem>>, %arg7: memref<1x128xf32, #tpu.memory_space<vmem>>) attributes {dimension_semantics = [], scalar_prefetch = 0 : i64, scratch_operands = 0 : i64, tpu.core_type = #tpu.core_type<tc>} {
    %c0 = arith.constant 0 : index
    %c0_0 = arith.constant 0 : index
    %0 = vector.load %arg0[%c0, %c0_0] : memref<1x15xf32, #tpu.memory_space<vmem>>, vector<1x15xf32>
    %c0_1 = arith.constant 0 : index
    %c0_2 = arith.constant 0 : index
    %1 = vector.load %arg1[%c0_1, %c0_2] : memref<15x128xf32, #tpu.memory_space<vmem>>, vector<15x128xf32>
    %cst = arith.constant dense<0.000000e+00> : vector<1x128xf32>
    %2 = tpu.matmul %0, %1, %cst {dimension_numbers = #tpu.dot_dimension_numbers<[1], [0], [0], [1], [0, 0, 1, 1], [], []>} : vector<1x15xf32>, vector<15x128xf32>, vector<1x128xf32> -> vector<1x128xf32>
    %3 = tpu.iota {dimensions = array<i32: 1>} : vector<1x128xi32>
    %c0_3 = arith.constant 0 : index
    %c0_4 = arith.constant 0 : index
    %4 = vector.load %arg2[%c0_3, %c0_4] : memref<1x128xf32, #tpu.memory_space<vmem>>, vector<1x128xf32>
    %c64_i32 = arith.constant 64 : i32
    %5 = vector.broadcast %c64_i32 : i32 to vector<1x128xi32>
    %6 = arith.cmpi slt, %3, %5 : vector<1x128xi32>
    %7 = math.cos %2 : vector<1x128xf32>
    %8 = math.sin %2 : vector<1x128xf32>
    %9 = arith.select %6, %7, %8 : vector<1x128xi1>, vector<1x128xf32>
    %10 = arith.mulf %4, %9 : vector<1x128xf32>
    %c0_5 = arith.constant 0 : index
    %c0_6 = arith.constant 0 : index
    %11 = vector.load %arg6[%c0_5, %c0_6] : memref<1x128xf32, #tpu.memory_space<vmem>>, vector<1x128xf32>
    tpu.vector_store %arg6[%c0_5, %c0_6], %10 {strides = array<i32>} : memref<1x128xf32, #tpu.memory_space<vmem>>, vector<1x128xf32>,
    %c0_7 = arith.constant 0 : index
    %c0_8 = arith.constant 0 : index
    %12 = vector.load %arg3[%c0_7, %c0_8] : memref<128x128xf32, #tpu.memory_space<vmem>>, vector<128x128xf32>
    %cst_9 = arith.constant dense<0.000000e+00> : vector<1x128xf32>
    %13 = tpu.matmul %10, %12, %cst_9 {dimension_numbers = #tpu.dot_dimension_numbers<[1], [0], [0], [1], [0, 0, 1, 1], [], []>} : vector<1x128xf32>, vector<128x128xf32>, vector<1x128xf32> -> vector<1x128xf32>
    %14 = arith.mulf %13, %13 : vector<1x128xf32>
    %c64_i32_10 = arith.constant 64 : i32
    %15 = tpu.dynamic_rotate %14 by %c64_i32_10 dim 1 : vector<1x128xf32>, i32 -> vector<1x128xf32>
    %16 = arith.addf %14, %15 : vector<1x128xf32>
    %17 = vector.shape_cast %16 : vector<1x128xf32> to vector<1x1x128xf32>
    %cst_11 = arith.constant dense<0.000000e+00> : vector<1xf32>
    %18 = vector.multi_reduction <add>, %17, %cst_11 [1, 2] : vector<1x1x128xf32> to vector<1xf32>
    %19 = vector.shape_cast %18 : vector<1xf32> to vector<1x1x1xf32>
    %20 = vector.extract %19[0, 0, 0] : f32 from vector<1x1x1xf32>
    %cst_12 = arith.constant 5.000000e-01 : f32
    %21 = arith.mulf %cst_12, %20 : f32
    %cst_13 = arith.constant 1.000000e+00 : f32
    %22 = arith.divf %cst_13, %21 : f32
    %23 = vector.broadcast %22 : f32 to vector<1x128xf32>
    %24 = arith.mulf %16, %23 : vector<1x128xf32>
    %c0_14 = arith.constant 0 : index
    %c0_15 = arith.constant 0 : index
    %25 = vector.load %arg7[%c0_14, %c0_15] : memref<1x128xf32, #tpu.memory_space<vmem>>, vector<1x128xf32>
    tpu.vector_store %arg7[%c0_14, %c0_15], %24 {strides = array<i32>} : memref<1x128xf32, #tpu.memory_space<vmem>>, vector<1x128xf32>,
    %26 = tpu.iota {dimensions = array<i32: 1>} : vector<1x256xi32>
    %c64_i32_16 = arith.constant 64 : i32
    %27 = vector.broadcast %c64_i32_16 : i32 to vector<1x256xi32>
    %28 = arith.cmpi slt, %26, %27 : vector<1x256xi32>
    %29 = tpu.concatenate %24, %24 in 1 : vector<1x128xf32>, vector<1x128xf32> -> vector<1x256xf32>
    %cst_17 = arith.constant 0.000000e+00 : f32
    %30 = vector.broadcast %cst_17 : f32 to vector<1x256xf32>
    %31 = arith.select %28, %29, %30 : vector<1x256xi1>, vector<1x256xf32>
    %32 = vector.shape_cast %31 : vector<1x256xf32> to vector<1x256xf32>
    %33 = vector.broadcast %32 : vector<1x256xf32> to vector<16x256xf32>
    %34 = tpu.iota {dimensions = array<i32: 0>} : vector<16x256xi32>
    %c1_i32 = arith.constant 1 : i32
    %35 = vector.broadcast %c1_i32 : i32 to vector<16x256xi32>
    %36 = arith.andi %34, %35 : vector<16x256xi32>
    %c0_i32 = arith.constant 0 : i32
    %37 = vector.broadcast %c0_i32 : i32 to vector<16x256xi32>
    %38 = arith.cmpi ne, %36, %37 : vector<16x256xi32>
    %c8_i32 = arith.constant 8 : i32
    %39 = tpu.dynamic_rotate %33 by %c8_i32 dim 1 : vector<16x256xf32>, i32 -> vector<16x256xf32>
    %40 = arith.select %38, %39, %33 : vector<16x256xi1>, vector<16x256xf32>
    %c2_i32 = arith.constant 2 : i32
    %41 = vector.broadcast %c2_i32 : i32 to vector<16x256xi32>
    %42 = arith.andi %34, %41 : vector<16x256xi32>
    %c0_i32_18 = arith.constant 0 : i32
    %43 = vector.broadcast %c0_i32_18 : i32 to vector<16x256xi32>
    %44 = arith.cmpi ne, %42, %43 : vector<16x256xi32>
    %c16_i32 = arith.constant 16 : i32
    %45 = tpu.dynamic_rotate %40 by %c16_i32 dim 1 : vector<16x256xf32>, i32 -> vector<16x256xf32>
    %46 = arith.select %44, %45, %40 : vector<16x256xi1>, vector<16x256xf32>
    %c4_i32 = arith.constant 4 : i32
    %47 = vector.broadcast %c4_i32 : i32 to vector<16x256xi32>
    %48 = arith.andi %34, %47 : vector<16x256xi32>
    %c0_i32_19 = arith.constant 0 : i32
    %49 = vector.broadcast %c0_i32_19 : i32 to vector<16x256xi32>
    %50 = arith.cmpi ne, %48, %49 : vector<16x256xi32>
    %c32_i32 = arith.constant 32 : i32
    %51 = tpu.dynamic_rotate %46 by %c32_i32 dim 1 : vector<16x256xf32>, i32 -> vector<16x256xf32>
    %52 = arith.select %50, %51, %46 : vector<16x256xi1>, vector<16x256xf32>
    %c8_i32_20 = arith.constant 8 : i32
    %53 = vector.broadcast %c8_i32_20 : i32 to vector<16x256xi32>
    %54 = arith.andi %34, %53 : vector<16x256xi32>
    %c0_i32_21 = arith.constant 0 : i32
    %55 = vector.broadcast %c0_i32_21 : i32 to vector<16x256xi32>
    %56 = arith.cmpi ne, %54, %55 : vector<16x256xi32>
    %c64_i32_22 = arith.constant 64 : i32
    %57 = tpu.dynamic_rotate %52 by %c64_i32_22 dim 1 : vector<16x256xf32>, i32 -> vector<16x256xf32>
    %58 = arith.select %56, %57, %52 : vector<16x256xi1>, vector<16x256xf32>
    %c0_23 = arith.constant 0 : index
    %c0_24 = arith.constant 0 : index
    %59 = vector.load %arg4[%c0_23, %c0_24] : memref<256x256xf32, #tpu.memory_space<vmem>>, vector<256x256xf32>
    %cst_25 = arith.constant dense<0.000000e+00> : vector<16x256xf32>
    %60 = tpu.matmul %58, %59, %cst_25 {dimension_numbers = #tpu.dot_dimension_numbers<[1], [0], [0], [1], [0, 0, 1, 1], [], []>} : vector<16x256xf32>, vector<256x256xf32>, vector<16x256xf32> -> vector<16x256xf32>
    %c0_26 = arith.constant 0 : index
    %c0_27 = arith.constant 0 : index
    %61 = vector.load %arg5[%c0_26, %c0_27] : memref<16x256xf32, #tpu.memory_space<vmem>>, vector<16x256xf32>
    tpu.vector_store %arg5[%c0_26, %c0_27], %60 {strides = array<i32>} : memref<16x256xf32, #tpu.memory_space<vmem>>, vector<16x256xf32>,
    return
  }
}

</mosaic_0001>

<bundles_post_ra>
// kernel: custom-call
= control target key start
LH: loop header
LB: loop body
LE: loop exit
PB: predicated region body
PF: predicated region fallthrough
CT: control target
= control target key end

     0   :  { %s126_s0 = inlined_call_operand.vmem [shape: f32[8,8], index: 0, kind: input, shape index: {}]   ;;  %s127_s1 = inlined_call_operand.vmem [shape: f32[8,8], index: 1, kind: input, shape index: {}]   ;;  %s128_s2 = inlined_call_operand.hbm [shape: c64[8,8], index: 2, kind: output, shape index: {}]  }
   0x1   :  { %s87_s11 = scalar_lea.hbm %s128_s2, 128 }
   0x2   :  { %4 = vsyncpa [#allocation0], 0  ;;  %s5_s14 = sshll.u32 %s126_s0, 4  ;;  %s6_s14 = int_to_ptr.vmem [resolvable:$true] %s5_s14 }
   0x3   :  { %s18_s15 = scalar_lea.vmem %s6_s14, 128  ;;  %p23_p1 = scmp.lt.s32.totalorder %s6_s14, %s6_s14 }
   0x4   :  { %p19_p0 = scmp.ne.s32.totalorder %s6_s14, %s18_s15  ;;  %p24_p2 = scmp.lt.s32.totalorder %s18_s15, %s18_s15 }
   0x6   :  { %p25_p3 = por %p24_p2, %p23_p1 }
   0x8   :  { %p26_p4 = pnand %p25_p3, %p19_p0 }
   0xa   :  { %29 = shalt.err (!%p26_p4)  }
   0xb   :  { %p31_p5 = scmp.ne.s32.totalorder %s128_s2, %s87_s11  ;;  %s32_s0 = scalar_lea.hbm %s128_s2, 256 }
   0xc   :  { %p33_p6 = scmp.lt.u32.totalorder %s32_s0, %s87_s11  ;;  %p34_p7 = scmp.lt.u32.totalorder %s87_s11, %s128_s2 }
   0xe   :  { %p35_p8 = por %p34_p7, %p33_p6 }
  0x10   :  { %p36_p9 = pnand %p35_p8, %p31_p5 }
  0x12   :  { %39 = shalt.err (!%p36_p9)  }
  0x13   :  { %8 = dma.vmem_to_hbm [thread:$0]  %s6_s14, 128, %s128_s2, [#allocation0] }
  0x14   :  { %65 = dma.done.wait [#allocation0], 128  }
  0x15   :  { %66 = vsyncadd [#allocation0], 4294967168 }
  0x16   :  { %10 = vsyncpa [#allocation0], 1 }
  0x17   :  { %11 = vsyncpa [#allocation1], 0  ;;  %s12_s28 = sshll.u32 %s127_s1, 4  ;;  %s13_s28 = int_to_ptr.vmem [resolvable:$true] %s12_s28 }
  0x18   :  { %s40_s29 = scalar_lea.vmem %s13_s28, 128  ;;  %p45_p11 = scmp.lt.s32.totalorder %s13_s28, %s13_s28 }
  0x19   :  { %p41_p10 = scmp.ne.s32.totalorder %s13_s28, %s40_s29  ;;  %p46_p12 = scmp.lt.s32.totalorder %s40_s29, %s40_s29 }
  0x1b   :  { %p47_p13 = por %p46_p12, %p45_p11 }
  0x1d   :  { %p48_p0 = pnand %p47_p13, %p41_p10 }
  0x1f   :  { %51 = shalt.err (!%p48_p0)  }
  0x20   :  { %p53_p1 = scmp.ne.s32.totalorder %s87_s11, %s32_s0  ;;  %p56_p2 = scmp.lt.u32.totalorder %s32_s0, %s32_s0 }
  0x22   :  { %p57_p3 = por %p56_p2, %p34_p7 }
  0x24   :  { %p59_p4 = por %p57_p3, %p33_p6 }
  0x26   :  { %p60_p5 = pnand %p59_p4, %p53_p1 }
  0x28   :  { %63 = shalt.err (!%p60_p5)  }
  0x29   :  { %15 = dma.vmem_to_hbm [thread:$0]  %s13_s28, 128, %s87_s11, [#allocation1] }
  0x2a   :  { %67 = dma.done.wait [#allocation1], 128  }
  0x2b   :  { %68 = vsyncadd [#allocation1], 4294967168 }
  0x2c   :  { %17 = vsyncpa [#allocation1], 1 }

// kernel: squeeze.5
= control target key start
LH: loop header
LB: loop body
LE: loop exit
PB: predicated region body
PF: predicated region fallthrough
CT: control target
= control target key end

     0   :  { %s135_s0 = inlined_call_operand.vmem [shape: f32[64], index: 0, kind: input, shape index: {}]   ;;  %s136_s1 = inlined_call_operand.hbm [shape: f32[8,8], index: 1, kind: output, shape index: {}]  }
   0x1   :  { %v5_v0 = vld [vmem:[%s135_s0] sm:$0x1] }
   0x2   :  { %6 = vst [vmem:[#allocation2] sm:$0x1] %v5_v0 }
   0x3   :  { %2 = vsyncpa [#allocation1], 0  ;;  %s94_s0 = smov 120   ;;  %s95_s8 = smov 104   ;;  %vm8_vm0 = vcmask 64512  }
   0x4   :  { %s96_s9 = smov 112   ;;  %s97_s10 = smov 96  }
   0x5   :  { %s98_s11 = smov 88   ;;  %s99_s12 = smov 80  }
   0x6   :  { %s100_s13 = smov 72   ;;  %s101_s14 = smov [#allocation0]  }
   0x7   :  { %s56_s15 = sshll.u32 %s101_s14, 4  ;;  %s57_s15 = int_to_ptr.vmem [resolvable:$true] %s56_s15 }
   0x8   :  { %s70_s16 = scalar_lea.vmem %s57_s15, 128  ;;  %p75_p1 = scmp.lt.s32.totalorder %s57_s15, %s57_s15 }
   0x9   :  { %v10_v1 = vld [vmem:[#allocation2] sm:$0x1]   ;;  %p71_p0 = scmp.ne.s32.totalorder %s57_s15, %s70_s16  ;;  %p76_p2 = scmp.lt.s32.totalorder %s70_s16, %s70_s16 }
   0xa   :  { %v22_v2 = vld [vmem:[#allocation2] sm:$0x1]   ;;  %11 = vrot.lane.b32.xlu0 %v10_v1, %s94_s0 }
   0xb   :  { %23 = vrot.lane.b32.xlu1 %v22_v2, %s95_s8  ;;  %v16_v3 = vld [vmem:[#allocation2] sm:$0x1]   ;;  %p77_p3 = por %p76_p2, %p75_p1 }
   0xc   :  { %v28_v4 = vld [vmem:[#allocation2] sm:$0x1]  }
   0xd   :  { %v7_v5 = vld [vmem:[#allocation2] sm:$0x1]   ;;  %p78_p4 = pnand %p77_p3, %p71_p0 }
   0xe   :  { %9 = vst.msk [vmem:[#allocation0] sm:$0x1] %vm8_vm0, %v7_v5   ;;  %17 = vrot.lane.b32.xlu0 %v16_v3, %s96_s9  ;;  %v34_v6 = vld [vmem:[#allocation2] sm:$0x1]  }
   0xf   :  { %29 = vrot.lane.b32.xlu1 %v28_v4, %s97_s10  ;;  %v40_v7 = vld [vmem:[#allocation2] sm:$0x1]  }
  0x10   :  { %v46_v8 = vld [vmem:[#allocation2] sm:$0x1]  }
  0x12   :  { %35 = vrot.lane.b32.xlu0 %v34_v6, %s98_s11 }
  0x13   :  { %41 = vrot.lane.b32.xlu1 %v40_v7, %s99_s12 }
  0x16   :  { %47 = vrot.lane.b32.xlu0 %v46_v8, %s100_s13 }
  0x7c   :  { %v12_v9 = vpop.permute.xlu0 %11  }
  0x7d   :  { %v24_v10 = vpop.permute.xlu1 %23   ;;  %15 = vst.msk [vmem:[#allocation0 + $0x1] sm:$0x1] %vm8_vm0, %v12_v9  }
  0x7e   :  { %27 = vst.msk [vmem:[#allocation0 + $0x3] sm:$0x1] %vm8_vm0, %v24_v10  }
  0x80   :  { %v18_v11 = vpop.permute.xlu0 %17  }
  0x81   :  { %v30_v12 = vpop.permute.xlu1 %29   ;;  %21 = vst.msk [vmem:[#allocation0 + $0x2] sm:$0x1] %vm8_vm0, %v18_v11  }
  0x82   :  { %33 = vst.msk [vmem:[#allocation0 + $0x4] sm:$0x1] %vm8_vm0, %v30_v12  }
  0x84   :  { %v36_v13 = vpop.permute.xlu0 %35  }
  0x85   :  { %v42_v14 = vpop.permute.xlu1 %41   ;;  %39 = vst.msk [vmem:[#allocation0 + $0x5] sm:$0x1] %vm8_vm0, %v36_v13  }
  0x86   :  { %45 = vst.msk [vmem:[#allocation0 + $0x6] sm:$0x1] %vm8_vm0, %v42_v14  }
  0x88   :  { %v48_v15 = vpop.permute.xlu0 %47  }
  0x89   :  { %51 = vst.msk [vmem:[#allocation0 + $0x7] sm:$0x1] %vm8_vm0, %v48_v15  }
  0x8a   :  { %81 = shalt.err (!%p78_p4)
}
  0x8b   :  { %s82_s19 = scalar_lea.hbm %s136_s1, 128 }
  0x8c   :  { %p83_p5 = scmp.ne.s32.totalorder %s136_s1, %s82_s19  ;;  %p86_p6 = scmp.lt.u32.totalorder %s82_s19, %s136_s1 }
  0x8e   :  { %p88_p7 = pnand %p86_p6, %p83_p5 }
  0x90   :  { %91 = shalt.err (!%p88_p7)
}
  0x91   :  { %59 = dma.vmem_to_hbm [thread:$0]  %s57_s15, 128, %s136_s1, [#allocation1]  }
  0x92   :  { %92 = dma.done.wait [#allocation1], 128  }
  0x93   :  { %93 = vsyncadd [#allocation1], 4294967168 }
  0x94   :  { %61 = vsyncpa [#allocation1], 1 }

// kernel: optical_ensemble.1
= control target key start
LH: loop header
LB: loop body
LE: loop exit
PB: predicated region body
PF: predicated region fallthrough
CT: control target
= control target key end

     0   :  { %vm30_vm0 = vcmask 1046528   ;;  %v897_v0 = vmov 0.0|0.0   ;;  %vm898_vm1 = vmmov 1   ;;  %vm899_vm3 = vmmov 0   ;;  %s907_s15 = smov 64   ;;  %s908_s19 = smov 8   ;;  %s1305_s1 = inlined_call_operand.vmem [shape: f32[15,128], index: 1, kind: input, shape index: {}]   ;;  %s1306_s0 = inlined_call_operand.vmem [shape: f32[1,15], index: 0, kind: input, shape index: {}]   ;;  %s1307_s3 = inlined_call_operand.vmem [shape: f32[128,128], index: 3, kind: input, shape index: {}]   ;;  %s1308_s2 = inlined_call_operand.vmem [shape: f32[1,128], index: 2, kind: input, shape index: {}]   ;;  %s1309_s6 = inlined_call_operand.vmem [shape: f32[1,128], index: 6, kind: output, shape index: {1}]   ;;  %s1310_s7 = inlined_call_operand.vmem [shape: f32[1,128], index: 7, kind: output, shape index: {2}]   ;;  %s1311_s4 = inlined_call_operand.vmem [shape: f32[256,256], index: 4, kind: input, shape index: {}]   ;;  %s1312_s5 = inlined_call_operand.vmem [shape: f32[16,256], index: 5, kind: output, shape index: {0}]  }
   0x1   :  { %747 = vmatprep.subr.bf16.mxu1 %v897_v0  ;;  %v24_v1 = vld [vmem:[%s1305_s1] sm:$0xff]  ;;  %v25_v2 = vld [vmem:[%s1305_s1 + $0x8] sm:$0x7f]  ;;  %vm749_vm2 = vmpackc.low %vm30_vm0, %vm898_vm1  ;;  %v900_v4 = vmov 0.0   ;;  %vm26_vm4 = vcmask 121856   ;;  %s909_s8 = smov 16  }
   0x2   :  { %v748_v3 = vpack.c.bf16 %v25_v2, %v24_v1  ;;  %709 = vmatprep.mubr.msk.f32.mxu1 %vm899_vm3, %v900_v4  ;;  %v23_v5 = vld [vmem:[%s1306_s0] sm:$0x1]  ;;  %v319_v7 = vld [vmem:[%s1307_s3 + $0x8] sm:$0xff]  ;;  %v320_v9 = vld [vmem:[%s1307_s3 + $0x10] sm:$0xff]  ;;  %v901_v42 = vmov 683565275  }
   0x3   :  { %v318_v6 = vld [vmem:[%s1307_s3] sm:$0xff]  ;;  %v321_v10 = vld [vmem:[%s1307_s3 + $0x18] sm:$0xff]  ;;  %v323_v13 = vld [vmem:[%s1307_s3 + $0x28] sm:$0xff]  ;;  %v902_v44 = vmov 2475754826  }
   0x4   :  { %750 = vmatpush3.bf16.msk.msra.mxu1 %vm749_vm2, %v748_v3  ;;  %v752_v8 = vpack.c.bf16 %v319_v7, %v318_v6  ;;  %v755_v11 = vpack.c.bf16 %v321_v10, %v320_v9  ;;  %v322_v12 = vld [vmem:[%s1307_s3 + $0x20] sm:$0xff]  ;;  %v324_v15 = vld [vmem:[%s1307_s3 + $0x30] sm:$0xff]  ;;  %v325_v16 = vld [vmem:[%s1307_s3 + $0x38] sm:$0xff]  ;;  %v903_v47 = vmov 2131351028  }
   0x5   :  { %751 = vmatprep.subr.bf16.mxu1 %v897_v0  ;;  %v758_v14 = vpack.c.bf16 %v323_v13, %v322_v12  ;;  %v761_v17 = vpack.c.bf16 %v325_v16, %v324_v15  ;;  %v326_v18 = vld [vmem:[%s1307_s3 + $0x40] sm:$0xff]  ;;  %v327_v19 = vld [vmem:[%s1307_s3 + $0x48] sm:$0xff]  ;;  %v328_v21 = vld [vmem:[%s1307_s3 + $0x50] sm:$0xff]  ;;  %v904_v50 = vmov 2102212464  }
   0x6   :  { %v764_v20 = vpack.c.bf16 %v327_v19, %v326_v18  ;;  %v329_v22 = vld [vmem:[%s1307_s3 + $0x58] sm:$0xff]  ;;  %v330_v24 = vld [vmem:[%s1307_s3 + $0x60] sm:$0xff]  ;;  %v331_v25 = vld [vmem:[%s1307_s3 + $0x68] sm:$0xff]  ;;  %v905_v53 = vmov 920167782  }
   0x7   :  { %710 = vmatmul.mubr.msk.f32.vlgmr.msra.gmra.mrb[0].mxu1 %vm26_vm4, %v23_v5  ;;  %v767_v23 = vpack.c.bf16 %v329_v22, %v328_v21  ;;  %v770_v26 = vpack.c.bf16 %v331_v25, %v330_v24  ;;  %v332_v27 = vld [vmem:[%s1307_s3 + $0x70] sm:$0xff]  ;;  %v333_v28 = vld [vmem:[%s1307_s3 + $0x78] sm:$0xff]  ;;  %v906_v56 = vmov 1326507024  }
   0x8   :  { %744 = vmatprep.mubr.msk.f32.mxu1 %vm899_vm3, %v900_v4  ;;  %753 = vmatpush3.bf16.msra.mxu1 %v752_v8  ;;  %v773_v29 = vpack.c.bf16 %v333_v28, %v332_v27 }
   0x9   :  { %754 = vmatprep.subr.bf16.mxu1 %v897_v0 }
   0xc   :  { %756 = vmatpush3.bf16.msra.mxu1 %v755_v11 }
   0xd   :  { %757 = vmatprep.subr.bf16.mxu1 %v897_v0 }
  0x10   :  { %759 = vmatpush3.bf16.msra.mxu1 %v758_v14 }
  0x11   :  { %760 = vmatprep.subr.bf16.mxu1 %v897_v0 }
  0x14   :  { %762 = vmatpush3.bf16.msra.mxu1 %v761_v17 }
  0x15   :  { %763 = vmatprep.subr.bf16.mxu1 %v897_v0 }
  0x18   :  { %765 = vmatpush3.bf16.msra.mxu1 %v764_v20 }
  0x19   :  { %766 = vmatprep.subr.bf16.mxu1 %v897_v0 }
  0x1c   :  { %768 = vmatpush3.bf16.msra.mxu1 %v767_v23 }
  0x1d   :  { %769 = vmatprep.subr.bf16.mxu1 %v897_v0 }
  0x20   :  { %771 = vmatpush3.bf16.msra.mxu1 %v770_v26 }
  0x21   :  { %772 = vmatprep.subr.bf16.mxu1 %v897_v0 }
  0x24   :  { %774 = vmatpush3.bf16.msra.mxu1 %v773_v29 }
  0xda   :  { %v1010_v30 = vpop.f32.mrb[0].mxu1 }
  0xdb   :  { %v111_v31 = vand.u32 2139095040, %v1010_v30  ;;  %v711_v32 = vpop.f32.mrb[1].mxu1  ;;  %v108_v36 = vand.u32 2147483647, %v1010_v30  ;;  %vm110_vm12 = vcmp.lt.s32.totalorder %v1010_v30, 0 }
  0xdd   :  { %v112_v33 = vshrl.u32 %v111_v31, 23  ;;  %v115_v39 = vand.u32 8388607, %v108_v36  ;;  %vm109_vm13 = vcmp.le.f32.partialorder %v108_v36, 0.7853982 }
  0xdf   :  { %v677_v34 = vadd.s32 4294967169, %v112_v33  ;;  %v116_v58 = vor.u32 8388608, %v115_v39 }
  0xe1   :  { %v118_v35 = vadd.s32 1, %v677_v34  ;;  %v156_v9 = vshll.u32 %v116_v58, 8 }
  0xe3   :  { %vm119_vm5 = vcmp.gt.s32.totalorder %v118_v35, 0 }
  0xe4   :  { %v120_v37 = vsel %vm119_vm5, %v118_v35, 0  ;;  %vm200_vm5 = vweird.f32 %v1010_v30 }
  0xe5   :  { %v122_v38 = vand.u32 31, %v120_v37  ;;  %v121_v41 = vshrl.u32 %v120_v37, 5 }
  0xe7   :  { %v123_v40 = vsub.s32 32, %v122_v38  ;;  %v125_v43 = vshll.u32 %v901_v42, %v122_v38  ;;  %v128_v45 = vshll.u32 %v902_v44, %v122_v38  ;;  %v131_v49 = vshll.u32 %v903_v47, %v122_v38 }
  0xe8   :  { %v134_v52 = vshll.u32 %v904_v50, %v122_v38  ;;  %v137_v55 = vshll.u32 %v905_v53, %v122_v38  ;;  %vm140_vm6 = vcmp.lt.s32.totalorder %v121_v41, 1  ;;  %vm143_vm7 = vcmp.lt.s32.totalorder %v121_v41, 4 }
  0xe9   :  { %v126_v46 = vshrl.u32 %v902_v44, %v123_v40  ;;  %v129_v48 = vshrl.u32 %v903_v47, %v123_v40  ;;  %v132_v51 = vshrl.u32 %v904_v50, %v123_v40  ;;  %v135_v54 = vshrl.u32 %v905_v53, %v123_v40 }
  0xea   :  { %v138_v57 = vshrl.u32 %v906_v56, %v123_v40  ;;  %v124_v3 = vshrl.u32 %v901_v42, %v123_v40  ;;  %vm142_vm8 = vcmp.lt.s32.totalorder %v121_v41, 3  ;;  %vm141_vm9 = vcmp.lt.s32.totalorder %v121_v41, 2 }
  0xeb   :  { %v127_v59 = vor.u32 %v126_v46, %v125_v43  ;;  %v130_v60 = vor.u32 %v129_v48, %v128_v45  ;;  %v133_v61 = vor.u32 %v132_v51, %v131_v49  ;;  %v136_v62 = vor.u32 %v135_v54, %v134_v52 }
  0xec   :  { %v139_v63 = vor.u32 %v138_v57, %v137_v55  ;;  %v104_v52 = vlaneseq }
  0xed   :  { %v145_v0 = vsel %vm143_vm7, %v133_v61, 2102212464  ;;  %v148_v1 = vsel %vm140_vm6, %v127_v59, %v130_v60  ;;  %v152_v2 = vsel %vm140_vm6, %v130_v60, %v133_v61  ;;  %v149_v5 = vsel %vm143_vm7, %v136_v62, 920167782 }
  0xee   :  { %v153_v6 = vsel %vm143_vm7, %v139_v63, 1326507024  ;;  %v150_v7 = vsel %vm142_vm8, %v133_v61, %v149_v5  ;;  %v144_v10 = vsel %vm140_vm6, %v124_v3, %v127_v59  ;;  %v146_v11 = vsel %vm142_vm8, %v130_v60, %v145_v0 }
  0xef   :  { %v154_v8 = vsel %vm142_vm8, %v136_v62, %v153_v6  ;;  %v151_v12 = vsel %vm141_vm9, %v148_v1, %v150_v7  ;;  %v147_v18 = vsel %vm141_vm9, %v144_v10, %v146_v11  ;;  %v1030_v56 = vand.u32 127, %v104_v52 }
  0xf0   :  { %v155_v13 = vsel %vm141_vm9, %v152_v2, %v154_v8  ;;  %v1019_v16 = vmul.u32.u64.low %v156_v9, %v151_v12  ;;  %v1020_v17 = vmul.u32.u64.high %v156_v9, %v151_v12, %v1019_v16  ;;  %v163_v20 = vmul.u32 %v156_v9, %v147_v18  ;;  %v106_v2 = vld [vmem:[%s1308_s2] sm:$0x1] }
  0xf1   :  { %v1016_v14 = vmul.u32.u64.low %v156_v9, %v155_v13  ;;  %v1017_v15 = vmul.u32.u64.high %v156_v9, %v155_v13, %v1016_v14  ;;  %vm107_vm0 = vcmp.lt.s32.totalorder %v1030_v56, 64  ;;  %vm408_vm6 = vcmask 1040384  }
  0xf2   :  { %v166_v19 = vadd.s32 1, %v1020_v17  ;;  %vm449_vm7 = vcmp.lt.s32.totalorder %v1030_v56, 8 }
  0xf3   :  { %vm165_vm10 = vc.u32 %v1017_v15, %v1019_v16  ;;  %v164_v33 = vadd.s32 %v1019_v16, %v1017_v15 }
  0xf4   :  { %v167_v21 = vsel %vm165_vm10, %v166_v19, %v1020_v17  ;;  %vm468_vm10 = vcmp.lt.s32.totalorder %v1030_v56, 16 }
  0xf5   :  { %v168_v22 = vadd.s32 %v167_v21, %v163_v20 }
  0xf7   :  { %v169_v23 = vadd.s32 536870912, %v168_v22 }
  0xf9   :  { %v170_v24 = vshrl.u32 %v169_v23, 30 }
  0xfb   :  { %v171_v25 = vshll.u32 %v170_v24, 30  ;;  %v194_v46 = vsub.s32 4, %v170_v24 }
  0xfd   :  { %v172_v26 = vsub.s32 %v168_v22, %v171_v25  ;;  %v195_v49 = vsel %vm110_vm12, %v194_v46, %v170_v24  ;;  %v1043_v22 = vshrl.u32 %v104_v52, 7 }
  0xfe   :  { %v197_v51 = vsel %vm109_vm13, 0, %v195_v49  ;;  %v523_v49 = vld [vmem:[%s1311_s4 + $0x28] sm:$0xff] }
  0xff   :  { %v174_v27 = vsub.s32 0, %v172_v26  ;;  %v304_v53 = vadd.s32 3, %v197_v51  ;;  %v201_v54 = vand.u32 3, %v197_v51  ;;  %v432_v23 = vsub.s32 0, %v1043_v22 }
 0x101   :  { %v678_v28 = vmin.u32 %v174_v27, %v172_v26  ;;  %v305_v55 = vand.u32 3, %v304_v53  ;;  %vm206_vm14 = vcmp.eq.s32.totalorder %v201_v54, 2  ;;  %vm203_vm1 = vcmp.eq.s32.totalorder %v201_v54, 0  ;;  %v522_v53 = vld [vmem:[%s1311_s4 + $0x20] sm:$0xff] }
 0x102   :  { %vm202_vm3 = vcmp.lt.s32.totalorder %v201_v54, 2  ;;  %v524_v54 = vld [vmem:[%s1311_s4 + $0x30] sm:$0xff] }
 0x103   :  { %v176_v29 = vclz %v678_v28  ;;  %vm310_vm15 = vcmp.eq.s32.totalorder %v305_v55, 2  ;;  %vm307_vm2 = vcmp.eq.s32.totalorder %v305_v55, 0  ;;  %vm306_vm4 = vcmp.lt.s32.totalorder %v305_v55, 2  ;;  %v527_v55 = vld [vmem:[%s1311_s4 + $0x48] sm:$0xff] }
 0x105   :  { %v679_v31 = vadd.s32 4294967294, %v176_v29 }
 0x107   :  { %vm680_vm11 = vcmp.lt.s32.totalorder %v679_v31, 0 }
 0x108   :  { %v179_v32 = vsel %vm680_vm11, 0, %v679_v31  ;;  %v1053_v31 = vadd.s32 8, %v1043_v22 }
 0x109   :  { %v180_v34 = vsub.s32 32, %v179_v32  ;;  %v184_v35 = vsub.s32 4294967266, %v179_v32  ;;  %v181_v37 = vshll.u32 %v172_v26, %v179_v32  ;;  %v437_v26 = vrot.slane %v900_v4, %v432_v23 }
 0x10a   :  { %v442_v32 = vand.u32 1, %v1053_v31 }
 0x10b   :  { %v182_v38 = vshrl.u32 %v164_v33, %v180_v34  ;;  %v185_v39 = vadd.s32 127, %v184_v35  ;;  %v441_v33 = vand.u32 1, %v1043_v22 }
 0x10c   :  { %vm444_vm8 = vcmp.ne.s32.totalorder %v442_v32, 0  ;;  %v553_v32 = vld [vmem:[%s1311_s4 + $0x118] sm:$0xff] }
 0x10d   :  { %v183_v40 = vor.u32 %v182_v38, %v181_v37  ;;  %v186_v41 = vshll.u32 %v185_v39, 23  ;;  %vm443_vm9 = vcmp.ne.s32.totalorder %v441_v33, 0 }
 0x10f   :  { %v187_v42 = vor.u32 4788187, %v186_v41  ;;  %v190_v44 = vcvt.s32.f32 %v183_v40 }
 0x111   :  { %v188_v43 = vand.u32 2147483647, %v187_v42  ;;  %v519_v42 = vld [vmem:[%s1311_s4 + $0x8] sm:$0xff] }
 0x113   :  { %v191_v45 = vmul.f32 %v190_v44, %v188_v43  ;;  %v521_v43 = vld [vmem:[%s1311_s4 + $0x18] sm:$0xff]  ;;  %v518_v44 = vld [vmem:[%s1311_s4] sm:$0xff] }
 0x115   :  { %v192_v47 = vxor.u32 2147483648, %v191_v45 }
 0x117   :  { %v193_v48 = vsel %vm110_vm12, %v192_v47, %v191_v45  ;;  %v775_v47 = vpack.c.bf16 %v521_v43, %v519_v42  ;;  %v554_v43 = vld [vmem:[%s1311_s4 + $0x120] sm:$0xff] }
 0x118   :  { %v196_v50 = vsel %vm109_vm13, %v1010_v30, %v193_v48  ;;  %v520_v48 = vld [vmem:[%s1311_s4 + $0x10] sm:$0xff]  ;;  %vm489_vm13 = vcmp.lt.s32.totalorder %v1030_v56, 32 }
 0x119   :  { %891 = vcosq.f32 %v196_v50  ;;  %v777_v51 = vpack.c.bf16 %v520_v48, %v518_v44  ;;  %776 = vmatprep.subr.bf16.mxu0 %v775_v47  ;;  %v556_v44 = vld [vmem:[%s1311_s4 + $0x130] sm:$0xff]  ;;  %v559_v47 = vld [vmem:[%s1311_s4 + $0x148] sm:$0xff]  ;;  %v561_v48 = vld [vmem:[%s1311_s4 + $0x158] sm:$0xff] }
 0x11a   :  { %893 = vsinq.f32 %v196_v50  ;;  %v525_v50 = vld [vmem:[%s1311_s4 + $0x38] sm:$0xff] }
 0x11b   :  { %v779_v52 = vpack.c.bf16 %v525_v50, %v523_v49  ;;  %778 = vmatpush1.bf16.msra.mxu0 %v777_v51  ;;  %v813_v49 = vpack.c.bf16 %v556_v44, %v554_v43  ;;  %v815_v50 = vpack.c.bf16 %v561_v48, %v559_v47  ;;  %v558_v51 = vld [vmem:[%s1311_s4 + $0x140] sm:$0xff]  ;;  %v477_v47 = vand.u32 4, %v1043_v22 }
 0x11d   :  { %780 = vmatprep.subr.bf16.mxu0 %v779_v52  ;;  %v560_v52 = vld [vmem:[%s1311_s4 + $0x150] sm:$0xff] }
 0x123   :  { %v892_v57 = vpop.eup %891 }
 0x124   :  { %v894_v58 = vpop.eup %893  ;;  %v207_v59 = vxor.u32 2147483648, %v892_v57 }
 0x125   :  { %v204_v60 = vxor.u32 2147483648, %v894_v58 }
 0x126   :  { %v208_v36 = vsel %vm206_vm14, %v207_v59, %v894_v58  ;;  %v312_v61 = vsel %vm310_vm15, %v207_v59, %v894_v58  ;;  %v781_v59 = vpack.c.bf16 %v524_v54, %v522_v53  ;;  %v563_v53 = vld [vmem:[%s1311_s4 + $0x168] sm:$0xff]  ;;  %v565_v54 = vld [vmem:[%s1311_s4 + $0x178] sm:$0xff]  ;;  %vm479_vm15 = vcmp.ne.s32.totalorder %v477_v47, 0 }
 0x127   :  { %v205_v62 = vsel %vm203_vm1, %v892_v57, %v204_v60  ;;  %v309_v63 = vsel %vm307_vm2, %v892_v57, %v204_v60  ;;  %v529_v57 = vld [vmem:[%s1311_s4 + $0x58] sm:$0xff] }
 0x128   :  { %v209_v0 = vsel %vm202_vm3, %v205_v62, %v208_v36  ;;  %v313_v1 = vsel %vm306_vm4, %v309_v63, %v312_v61  ;;  %v783_v60 = vpack.c.bf16 %v529_v57, %v527_v55  ;;  %v526_v36 = vld [vmem:[%s1311_s4 + $0x40] sm:$0xff]  ;;  %v528_v61 = vld [vmem:[%s1311_s4 + $0x50] sm:$0xff]  ;;  %v531_v62 = vld [vmem:[%s1311_s4 + $0x68] sm:$0xff]  ;;  %782 = vmatpush1.bf16.msra.mxu0 %v781_v59  ;;  %v817_v55 = vpack.c.bf16 %v560_v52, %v558_v51 }
 0x129   :  { %v210_v3 = vsel %vm200_vm5, nan, %v209_v0  ;;  %v314_v5 = vsel %vm200_vm5, nan, %v313_v1  ;;  %v533_v63 = vld [vmem:[%s1311_s4 + $0x78] sm:$0xff]  ;;  %v785_v0 = vpack.c.bf16 %v528_v61, %v526_v36  ;;  %v819_v57 = vpack.c.bf16 %v565_v54, %v563_v53  ;;  %v564_v59 = vld [vmem:[%s1311_s4 + $0x170] sm:$0xff] }
 0x12a   :  { %v315_v6 = vsel %vm107_vm0, %v210_v3, %v314_v5  ;;  %784 = vmatprep.subr.bf16.mxu0 %v783_v60  ;;  %v787_v1 = vpack.c.bf16 %v533_v63, %v531_v62  ;;  %v532_v3 = vld [vmem:[%s1311_s4 + $0x70] sm:$0xff]  ;;  %v535_v5 = vld [vmem:[%s1311_s4 + $0x88] sm:$0xff]  ;;  %v569_v36 = vld [vmem:[%s1311_s4 + $0x198] sm:$0xff] }
 0x12b   :  { %v316_v7 = vmul.f32 %v315_v6, %v106_v2  ;;  %v530_v2 = vld [vmem:[%s1311_s4 + $0x60] sm:$0xff]  ;;  %v537_v6 = vld [vmem:[%s1311_s4 + $0x98] sm:$0xff]  ;;  %v567_v60 = vld [vmem:[%s1311_s4 + $0x188] sm:$0xff] }
 0x12c   :  { %786 = vmatpush1.bf16.msra.mxu0 %v785_v0  ;;  %v823_v62 = vpack.c.bf16 %v569_v36, %v567_v60  ;;  %v566_v63 = vld [vmem:[%s1311_s4 + $0x180] sm:$0xff]  ;;  %v568_v0 = vld [vmem:[%s1311_s4 + $0x190] sm:$0xff] }
 0x12d   :  { %317 = vst [vmem:[%s1309_s6] sm:$0x1] %v316_v7  ;;  %745 = vmatmul.mubr.f32.vlgmr.msra.gmra.mrb[2].mxu1 %v316_v7  ;;  %v789_v7 = vpack.c.bf16 %v532_v3, %v530_v2  ;;  %788 = vmatprep.subr.bf16.mxu0 %v787_v1  ;;  %v571_v1 = vld [vmem:[%s1311_s4 + $0x1a8] sm:$0xff]  ;;  %v573_v2 = vld [vmem:[%s1311_s4 + $0x1b8] sm:$0xff]  ;;  %v825_v3 = vpack.c.bf16 %v568_v0, %v566_v63 }
 0x130   :  { %790 = vmatpush1.bf16.msra.mxu0 %v789_v7  ;;  %v572_v7 = vld [vmem:[%s1311_s4 + $0x1b0] sm:$0xff] }
 0x200   :  { %v400_v8 = vpop.f32.mrb[2].mxu1 }
 0x201   :  { %v404_v9 = vmul.f32 %v400_v8, %v400_v8  ;;  %v746_v30 = vpop.f32.mrb[3].mxu1  ;;  %v791_v8 = vpack.c.bf16 %v537_v6, %v535_v5  ;;  %v827_v5 = vpack.c.bf16 %v573_v2, %v571_v1  ;;  %v570_v6 = vld [vmem:[%s1311_s4 + $0x1a0] sm:$0xff] }
 0x202   :  { %v536_v30 = vld [vmem:[%s1311_s4 + $0x90] sm:$0xff] }
 0x203   :  { %405 = vrot.lane.b32.xlu0 %v404_v9, %s907_s15  ;;  %792 = vmatprep.subr.bf16.mxu0 %v791_v8  ;;  %v829_v8 = vpack.c.bf16 %v572_v7, %v570_v6 }
 0x275   :  { %v406_v10 = vpop.permute.xlu0 %405 }
 0x276   :  { %v407_v11 = vadd.f32 %v406_v10, %v404_v9  ;;  %v534_v9 = vld [vmem:[%s1311_s4 + $0x80] sm:$0xff]  ;;  %v539_v10 = vld [vmem:[%s1311_s4 + $0xa8] sm:$0xff] }
 0x278   :  { %v409_v12 = vsel %vm408_vm6, %v407_v11, 0.0 }
 0x279   :  { %410 = vadd.xlane.f32.xlu0 %v409_v12  ;;  %v793_v12 = vpack.c.bf16 %v536_v30, %v534_v9  ;;  %v575_v9 = vld [vmem:[%s1311_s4 + $0x1c8] sm:$0xff]  ;;  %v577_v30 = vld [vmem:[%s1311_s4 + $0x1d8] sm:$0xff] }
 0x27b   :  { %794 = vmatpush1.bf16.msra.mxu0 %v793_v12  ;;  %v576_v12 = vld [vmem:[%s1311_s4 + $0x1d0] sm:$0xff] }
 0x306   :  { %v411_v13 = vpop.xlane.xlu0 %410 }
 0x307   :  { %v412_v14 = vrot.slane %v411_v13, 4 }
 0x309   :  { %v413_v15 = vadd.f32 %v412_v14, %v411_v13  ;;  %v538_v14 = vld [vmem:[%s1311_s4 + $0xa0] sm:$0xff] }
 0x30b   :  { %v414_v16 = vrot.slane %v413_v15, 2 }
 0x30d   :  { %v415_v17 = vadd.f32 %v414_v16, %v413_v15  ;;  %v540_v15 = vld [vmem:[%s1311_s4 + $0xb0] sm:$0xff]  ;;  %v543_v16 = vld [vmem:[%s1311_s4 + $0xc8] sm:$0xff] }
 0x30f   :  { %v416_v18 = vrot.slane %v415_v17, 1 }
 0x311   :  { %v417_v19 = vadd.f32 %v416_v18, %v415_v17  ;;  %v545_v17 = vld [vmem:[%s1311_s4 + $0xd8] sm:$0xff]  ;;  %v797_v18 = vpack.c.bf16 %v540_v15, %v538_v14  ;;  %v457_v14 = vand.u32 2, %v1053_v31  ;;  %v579_v15 = vld [vmem:[%s1311_s4 + $0x1e8] sm:$0xff] }
 0x313   :  { %843 = vpush %v417_v19  ;;  %v799_v19 = vpack.c.bf16 %v545_v17, %v543_v16  ;;  %v581_v16 = vld [vmem:[%s1311_s4 + $0x1f8] sm:$0xff]  ;;  %vm459_vm11 = vcmp.ne.s32.totalorder %v457_v14, 0 }
 0x314   :  { %v835_v17 = vpack.c.bf16 %v581_v16, %v579_v15 }
 0x344   :  { %s844_s2 = spop %843 }
 0x345   :  { %s419_s6 = smul.f32 0.5, %s844_s2 }
 0x347   :  { %v420_v20 = vstv %s419_s6 }
 0x348   :  { %895 = vrcp.f32 %v420_v20  ;;  %v542_v20 = vld [vmem:[%s1311_s4 + $0xc0] sm:$0xff] }
 0x352   :  { %v896_v21 = vpop.eup %895 }
 0x353   :  { %845 = vpush %v896_v21  ;;  %v544_v21 = vld [vmem:[%s1311_s4 + $0xd0] sm:$0xff] }
 0x384   :  { %s846_s16 = spop %845 }
 0x385   :  { %v423_v24 = vstv %s846_s16 }
 0x386   :  { %v424_v25 = vmul.f32 %v423_v24, %v407_v11  ;;  %v541_v11 = vld [vmem:[%s1311_s4 + $0xb8] sm:$0xff] }
 0x387   :  { %v795_v13 = vpack.c.bf16 %v541_v11, %v539_v10  ;;  %v549_v24 = vld [vmem:[%s1311_s4 + $0xf8] sm:$0xff]  ;;  %v831_v10 = vpack.c.bf16 %v577_v30, %v575_v9  ;;  %v574_v11 = vld [vmem:[%s1311_s4 + $0x1c0] sm:$0xff] }
 0x388   :  { %425 = vst [vmem:[%s1310_s7] sm:$0x1] %v424_v25  ;;  %v428_v27 = vsel %vm107_vm0, %v424_v25, 0.0  ;;  %v801_v25 = vpack.c.bf16 %v544_v21, %v542_v20 }
 0x389   :  { %v433_v28 = vrot.slane %v428_v27, %v432_v23  ;;  %796 = vmatprep.subr.bf16.mxu0 %v795_v13  ;;  %v547_v23 = vld [vmem:[%s1311_s4 + $0xe8] sm:$0xff]  ;;  %v546_v27 = vld [vmem:[%s1311_s4 + $0xe0] sm:$0xff]  ;;  %v833_v13 = vpack.c.bf16 %v576_v12, %v574_v11 }
 0x38a   :  { %798 = vmatpush1.bf16.msra.mxu0 %v797_v18  ;;  %v578_v18 = vld [vmem:[%s1311_s4 + $0x1e0] sm:$0xff] }
 0x38b   :  { %v861_v29 = vpack.i.bf16 %v437_v26, %v433_v28  ;;  %800 = vmatprep.subr.bf16.mxu0 %v799_v19  ;;  %v580_v19 = vld [vmem:[%s1311_s4 + $0x1f0] sm:$0xff] }
 0x38c   :  { %v837_v20 = vpack.c.bf16 %v580_v19, %v578_v18 }
 0x38d   :  { %862 = vrot.lane.b32.xlu1 %v861_v29, %s908_s19  ;;  %v551_v29 = vld [vmem:[%s1311_s4 + $0x108] sm:$0xff] }
 0x38e   :  { %802 = vmatpush1.bf16.msra.mxu0 %v801_v25  ;;  %v456_v25 = vand.u32 2, %v1043_v22 }
 0x390   :  { %vm458_vm12 = vcmp.ne.s32.totalorder %v456_v25, 0 }
 0x3ff   :  { %v863_v4 = vpop.permute.xlu1 %862 }
 0x400   :  { %v865_v34 = vunpack.i.h.bf16 %v863_v4  ;;  %v864_v35 = vunpack.i.l.bf16 %v863_v4  ;;  %v807_v4 = vpack.c.bf16 %v553_v32, %v551_v29 }
 0x402   :  { %v450_v37 = vsel %vm449_vm7, %v864_v35, %v865_v34  ;;  %v451_v38 = vsel %vm449_vm7, %v865_v34, %v864_v35  ;;  %v550_v34 = vld [vmem:[%s1311_s4 + $0x100] sm:$0xff]  ;;  %v552_v35 = vld [vmem:[%s1311_s4 + $0x110] sm:$0xff] }
 0x403   :  { %v1058_v39 = vsel %vm444_vm8, %v451_v38, %v433_v28  ;;  %v1060_v40 = vsel %vm444_vm8, %v450_v37, %v437_v26  ;;  %v1073_v45 = vsel %vm443_vm9, %v451_v38, %v433_v28  ;;  %v1075_v46 = vsel %vm443_vm9, %v450_v37, %v437_v26  ;;  %v548_v28 = vld [vmem:[%s1311_s4 + $0xf0] sm:$0xff]  ;;  %v555_v37 = vld [vmem:[%s1311_s4 + $0x128] sm:$0xff]  ;;  %v557_v38 = vld [vmem:[%s1311_s4 + $0x138] sm:$0xff] }
 0x404   :  { %v866_v41 = vpack.i.bf16 %v1060_v40, %v1058_v39  ;;  %v871_v58 = vpack.i.bf16 %v1075_v46, %v1073_v45  ;;  %v803_v26 = vpack.c.bf16 %v549_v24, %v547_v23  ;;  %v805_v33 = vpack.c.bf16 %v548_v28, %v546_v27 }
 0x405   :  { %v811_v42 = vpack.c.bf16 %v557_v38, %v555_v37 }
 0x406   :  { %867 = vrot.lane.b32.xlu1 %v866_v41, %s909_s8  ;;  %804 = vmatprep.subr.bf16.mxu0 %v803_v26  ;;  %v809_v41 = vpack.c.bf16 %v552_v35, %v550_v34 }
 0x407   :  { %806 = vmatpush1.bf16.msra.mxu0 %v805_v33 }
 0x408   :  { %808 = vmatprep.subr.bf16.mxu0 %v807_v4 }
 0x40a   :  { %872 = vrot.lane.b32.xlu1 %v871_v58, %s909_s8  ;;  %v562_v58 = vld [vmem:[%s1311_s4 + $0x160] sm:$0xff]  ;;  %s910_s4 = smov 32  }
 0x40b   :  { %810 = vmatpush1.bf16.msra.mxu0 %v809_v41  ;;  %v821_v61 = vpack.c.bf16 %v564_v59, %v562_v58 }
 0x40c   :  { %812 = vmatprep.subr.bf16.mxu0 %v811_v42 }
 0x40f   :  { %814 = vmatpush1.bf16.msra.mxu0 %v813_v49 }
 0x410   :  { %816 = vmatprep.subr.bf16.mxu0 %v815_v50 }
 0x413   :  { %818 = vmatpush1.bf16.msra.mxu0 %v817_v55 }
 0x414   :  { %820 = vmatprep.subr.bf16.mxu0 %v819_v57 }
 0x417   :  { %822 = vmatpush1.bf16.msra.mxu0 %v821_v61 }
 0x418   :  { %824 = vmatprep.subr.bf16.mxu0 %v823_v62 }
 0x41b   :  { %826 = vmatpush1.bf16.msra.mxu0 %v825_v3 }
 0x41c   :  { %828 = vmatprep.subr.bf16.mxu0 %v827_v5 }
 0x41f   :  { %830 = vmatpush1.bf16.msra.mxu0 %v829_v8 }
 0x420   :  { %832 = vmatprep.subr.bf16.mxu0 %v831_v10 }
 0x423   :  { %834 = vmatpush1.bf16.msra.mxu0 %v833_v13 }
 0x424   :  { %836 = vmatprep.subr.bf16.mxu0 %v835_v17 }
 0x427   :  { %838 = vmatpush1.bf16.msra.mxu0 %v837_v20 }
 0x478   :  { %v868_v21 = vpop.permute.xlu1 %867 }
 0x479   :  { %v870_v23 = vunpack.i.h.bf16 %v868_v21  ;;  %v869_v24 = vunpack.i.l.bf16 %v868_v21 }
 0x47b   :  { %v470_v26 = vsel %vm468_vm10, %v869_v24, %v870_v23  ;;  %v472_v27 = vsel %vm468_vm10, %v870_v23, %v869_v24 }
 0x47c   :  { %v873_v28 = vpop.permute.xlu1 %872  ;;  %v475_v29 = vsel %vm459_vm11, %v472_v27, %v1058_v39  ;;  %v476_v32 = vsel %vm459_vm11, %v470_v26, %v1060_v40  ;;  %v478_v39 = vand.u32 4, %v1053_v31 }
 0x47d   :  { %v875_v33 = vunpack.i.h.bf16 %v873_v28  ;;  %v874_v4 = vunpack.i.l.bf16 %v873_v28  ;;  %v876_v34 = vpack.i.bf16 %v476_v32, %v475_v29 }
 0x47e   :  { %vm480_vm14 = vcmp.ne.s32.totalorder %v478_v39, 0 }
 0x47f   :  { %v469_v35 = vsel %vm468_vm10, %v874_v4, %v875_v33  ;;  %v471_v37 = vsel %vm468_vm10, %v875_v33, %v874_v4  ;;  %877 = vrot.lane.b32.xlu1 %v876_v34, %s910_s4 }
 0x480   :  { %v473_v38 = vsel %vm458_vm12, %v471_v37, %v1073_v45  ;;  %v474_v41 = vsel %vm458_vm12, %v469_v35, %v1075_v46 }
 0x481   :  { %v881_v42 = vpack.i.bf16 %v474_v41, %v473_v38 }
 0x483   :  { %882 = vrot.lane.b32.xlu1 %v881_v42, %s910_s4 }
 0x4f1   :  { %v878_v40 = vpop.permute.xlu1 %877 }
 0x4f2   :  { %v880_v43 = vunpack.i.h.bf16 %v878_v40  ;;  %v879_v44 = vunpack.i.l.bf16 %v878_v40 }
 0x4f4   :  { %v491_v48 = vsel %vm489_vm13, %v879_v44, %v880_v43  ;;  %v493_v45 = vsel %vm489_vm13, %v880_v43, %v879_v44 }
 0x4f5   :  { %v883_v49 = vpop.permute.xlu1 %882  ;;  %v496_v46 = vsel %vm480_vm14, %v493_v45, %v475_v29  ;;  %v497_v50 = vsel %vm480_vm14, %v491_v48, %v476_v32 }
 0x4f6   :  { %v885_v51 = vunpack.i.h.bf16 %v883_v49  ;;  %v884_v52 = vunpack.i.l.bf16 %v883_v49  ;;  %v886_v31 = vpack.i.bf16 %v497_v50, %v496_v46 }
 0x4f8   :  { %887 = vrot.lane.b32.xlu1 %v886_v31, %s907_s15  ;;  %v490_v53 = vsel %vm489_vm13, %v884_v52, %v885_v51  ;;  %v492_v22 = vsel %vm489_vm13, %v885_v51, %v884_v52 }
 0x4f9   :  { %v495_v54 = vsel %vm479_vm15, %v490_v53, %v474_v41  ;;  %v494_v55 = vsel %vm479_vm15, %v492_v22, %v473_v38 }
 0x4fa   :  { %646 = vmatprep.mubr.f32.mxu0 %v495_v54 }
 0x4fb   :  { %647 = vmatmul.mubr.f32.vlgmr.msra.gmra.mrb[0].mxu0 %v494_v55 }
 0x56a   :  { %v888_v57 = vpop.permute.xlu1 %887 }
 0x56b   :  { %v890_v58 = vunpack.i.h.bf16 %v888_v57  ;;  %v889_v59 = vunpack.i.l.bf16 %v888_v57 }
 0x56d   :  { %v511_v60 = vsel %vm107_vm0, %v889_v59, %v890_v58  ;;  %v513_v36 = vsel %vm107_vm0, %v890_v58, %v889_v59 }
 0x56e   :  { %652 = vmatprep.mubr.f32.mxu0 %v511_v60 }
 0x56f   :  { %653 = vmatmul.mubr.f32.gmra.mrb[2].mxu0 %v513_v36 }
 0x5ce   :  { %v648_v61 = vpop.f32.mrb[0].mxu0 }
 0x5cf   :  { %659 = vst [vmem:[%s1312_s5] sm:$0xff] %v648_v61  ;;  %v650_v62 = vpop.f32.mrb[1].mxu0 }
 0x5d0   :  { %660 = vst [vmem:[%s1312_s5 + $0x8] sm:$0xff] %v650_v62 }
 0x642   :  { %v654_v63 = vpop.f32.mrb[2].mxu0 }
 0x643   :  { %661 = vst [vmem:[%s1312_s5 + $0x10] sm:$0xff] %v654_v63  ;;  %v656_v0 = vpop.f32.mrb[3].mxu0 }
 0x644   :  { %662 = vst [vmem:[%s1312_s5 + $0x18] sm:$0xff] %v656_v0 }

</bundles_post_ra>
